<compile_context>
chip_gen: v7x
topology: tpu7x:2x2x1
jax: 0.10.0
libtpu: 0.0.40
codegen_flags: <defaults>
</compile_context>

<pallas_src>
import math

import jax
import jax.numpy as jnp
from jax.experimental import pallas as pl
from jax.experimental.pallas import tpu as pltpu


# ----------------------------- Pallas kernel -----------------------------

def _pe_slice_kernel(w_ref, o_ref):
    # One (block_rows, d_model) tile of the positional-embedding table.
    o_ref[...] = w_ref[...]


def cosine_positional_embedding_forward(weight, x):
    """forward(x) = weight[:, :x.shape[1], :].  x's values are unused."""
    _, max_len, d_model = weight.shape
    seq_len = x.shape[1]
    assert seq_len <= max_len

    # Row block: multiple of 8 sublanes, capped at 256 so long sequences still
    # get DMA/compute pipelining and multiple grid steps for megacore sharding.
    block_rows = min(256, 8 * pl.cdiv(seq_len, 8))
    grid = (pl.cdiv(seq_len, block_rows),)

    return pl.pallas_call(
        _pe_slice_kernel,
        out_shape=jax.ShapeDtypeStruct((1, seq_len, d_model), weight.dtype),
        grid=grid,
        in_specs=[pl.BlockSpec((None, block_rows, d_model),
                               lambda i: (0, i, 0))],
        out_specs=pl.BlockSpec((None, block_rows, d_model),
                               lambda i: (0, i, 0)),
        compiler_params=pltpu.CompilerParams(
            dimension_semantics=("parallel",)),
    )(weight)


# ------------------------- module init (plain JAX) -------------------------

def init_cosine_positional_embedding(d_model, max_len=512):
    """Builds the (1, max_len, d_model) sinusoidal table exactly as __init__."""
    assert d_model % 2 == 0, "PyTorch module requires even d_model"
    position = jnp.arange(max_len, dtype=jnp.float32)[:, None]           # (L,1)
    div_term = jnp.exp(jnp.arange(0, d_model, 2, dtype=jnp.float32)
                       * (-(math.log(10000.0) / d_model)))               # (D/2,)
    angles = position * div_term                                          # (L,D/2)
    pe = jnp.stack([jnp.sin(angles), jnp.cos(angles)], axis=-1)           # (L,D/2,2)
    pe = pe.reshape(max_len, d_model)       # even cols = sin, odd cols = cos
    # NOTE: the 0.1*randn(max_len, d_model) in the PyTorch __init__ is fully
    # overwritten by the sin/cos assignments for even d_model, so it is
    # intentionally omitted here.
    return pe[None]                                                       # (1,L,D)


# --------------------------------- main ---------------------------------

if __name__ == "__main__":
    d_model, max_len = 32, 512
    batch, seqlen = 2, 8

    key = jax.random.PRNGKey(0)
    weight = init_cosine_positional_embedding(d_model, max_len)
    x = jax.random.normal(key, (batch, seqlen, d_model), jnp.float32)

    fwd = jax.jit(cosine_positional_embedding_forward)
    out = jax.block_until_ready(fwd(weight, x))

    assert out.shape == (1, seqlen, d_model)
    ref = weight[:, :seqlen, :]                 # pure-JAX reference of forward
    assert jnp.allclose(out, ref)
    assert bool(jnp.all(jnp.isfinite(out)))
    print("KERNEL_OK")
</pallas_src>

<mosaic_0001>
module attributes {stable_mosaic.version = 11 : i64} {
  func.func @_pe_slice_kernel(%arg0: i32, %arg1: memref<1x8x32xf32, #tpu.memory_space<vmem>>, %arg2: memref<1x8x32xf32, #tpu.memory_space<vmem>>) attributes {dimension_semantics = [#tpu.dimension_semantics<parallel>], iteration_bounds = array<i64: 1>, scalar_prefetch = 0 : i64, scratch_operands = 0 : i64, tpu.core_type = #tpu.core_type<tc>, window_params = [{transform_indices = @transform_0, window_bounds = array<i64: 1, 8, 32>}, {transform_indices = @transform_1, window_bounds = array<i64: 1, 8, 32>}]} {
    %c0 = arith.constant 0 : index
    %c0_0 = arith.constant 0 : index
    %c0_1 = arith.constant 0 : index
    %0 = vector.load %arg1[%c0, %c0_0, %c0_1] : memref<1x8x32xf32, #tpu.memory_space<vmem>>, vector<1x8x32xf32>
    %1 = vector.shape_cast %0 : vector<1x8x32xf32> to vector<8x32xf32>
    %c0_2 = arith.constant 0 : index
    %c0_3 = arith.constant 0 : index
    %c0_4 = arith.constant 0 : index
    %2 = vector.load %arg2[%c0_2, %c0_3, %c0_4] : memref<1x8x32xf32, #tpu.memory_space<vmem>>, vector<1x8x32xf32>
    %3 = vector.shape_cast %2 : vector<1x8x32xf32> to vector<8x32xf32>
    %4 = vector.shape_cast %1 : vector<8x32xf32> to vector<1x8x32xf32>
    tpu.vector_store %arg2[%c0_2, %c0_3, %c0_4], %4 {strides = array<i32>} : memref<1x8x32xf32, #tpu.memory_space<vmem>>, vector<1x8x32xf32>,
    return
  }
  func.func @transform_0(%arg0: i32) -> (i32, i32, i32) {
    %c0_i32 = arith.constant 0 : i32
    %c0_i32_0 = arith.constant 0 : i32
    %c0_i32_1 = arith.constant 0 : i32
    return %c0_i32, %arg0, %c0_i32_0 : i32, i32, i32
  }
  func.func @transform_1(%arg0: i32) -> (i32, i32, i32) {
    %c0_i32 = arith.constant 0 : i32
    %c0_i32_0 = arith.constant 0 : i32
    %c0_i32_1 = arith.constant 0 : i32
    return %c0_i32, %arg0, %c0_i32_0 : i32, i32, i32
  }
}

</mosaic_0001>

<bundles_post_ra>
// kernel: cosine_positional_embedding_forward.1
= control target key start
LH: loop header
LB: loop body
LE: loop exit
PB: predicated region body
PF: predicated region fallthrough
CT: control target
= control target key end

     0   :  { %vm10_vm0 = vcmask 261120   ;;  %s77_s0 = inlined_call_operand.vmem [shape: f32[1,512,32], index: 0, kind: input, shape index: {}]   ;;  %s78_s1 = inlined_call_operand.hbm [shape: f32[1,8,32], index: 1, kind: output, shape index: {}]  }
   0x1   :  { %v9_v0 = vld [vmem:[%s77_s0] sm:$0xff] }
   0x2   :  { %6 = vsyncpa [#allocation3], 0  ;;  %11 = vst.msk [vmem:[#allocation2] sm:$0xff] %vm10_vm0, %v9_v0  ;;  %s51_s8 = smov [#allocation2]  }
   0x3   :  { %s18_s9 = sshll.u32 %s51_s8, 4  ;;  %s19_s9 = int_to_ptr.vmem [resolvable:$true] %s18_s9 }
   0x4   :  { %s27_s10 = scalar_lea.vmem %s19_s9, 128  ;;  %p32_p1 = scmp.lt.s32.totalorder %s19_s9, %s19_s9 }
   0x5   :  { %p28_p0 = scmp.ne.s32.totalorder %s19_s9, %s27_s10  ;;  %p33_p2 = scmp.lt.s32.totalorder %s27_s10, %s27_s10 }
   0x7   :  { %p34_p3 = por %p33_p2, %p32_p1 }
   0x9   :  { %p35_p4 = pnand %p34_p3, %p28_p0 }
   0xb   :  { %38 = shalt.err (!%p35_p4)
}
   0xc   :  { %s39_s13 = scalar_lea.hbm %s78_s1, 128 }
   0xd   :  { %p40_p5 = scmp.ne.s32.totalorder %s78_s1, %s39_s13  ;;  %p43_p6 = scmp.lt.u32.totalorder %s39_s13, %s78_s1 }
   0xf   :  { %p45_p7 = pnand %p43_p6, %p40_p5 }
  0x11   :  { %48 = shalt.err (!%p45_p7)
}
  0x12   :  { %21 = dma.vmem_to_hbm [thread:$0]  %s19_s9, 128, %s78_s1, [#allocation3]  }
  0x13   :  { %49 = dma.done.wait [#allocation3], 128  }
  0x14   :  { %50 = vsyncadd [#allocation3], 4294967168 }
  0x15   :  { %25 = vsyncpa [#allocation3], 1 }

</bundles_post_ra>
